<compile_context>
chip_gen: v5e
topology: v5e:2x2
jax: 0.10.0
libtpu: 0.0.40
codegen_flags: <defaults>
</compile_context>

<pallas_src>
import functools

import jax
import jax.numpy as jnp
from jax.experimental import pallas as pl
from jax.experimental.pallas import tpu as pltpu


# ----------------------------------------------------------------------------
# Fused Pallas kernel: full GAT_adj_matrix forward for one batch element.
# ----------------------------------------------------------------------------
def _gat_fused_kernel(x_ref, bias_ref, w_hid_ref, a_hid_ref, w_out_ref,
                      a_out_ref, o_ref, *, num_heads, f_hid, alpha):
    # x_ref    : (N, F_in)       f32
    # bias_ref : (N, N)          bf16 additive adjacency bias (0 or ~-1e9)
    # w_hid_ref: (F_in, H*F_hid) f32  (all heads' W stacked along columns)
    # a_hid_ref: (2*H, F_hid)    f32  (rows 2h / 2h+1 = a1 / a2 of head h)
    # w_out_ref: (H*F_hid, F_out)
    # a_out_ref: (2, F_out)
    # o_ref    : (N, F_out)
    f32, bf16 = jnp.float32, jnp.bfloat16

    bias = bias_ref[...].astype(f32)                        # (N, N)
    x = x_ref[...].astype(bf16)                             # (N, F_in)
    w_hid = w_hid_ref[...].astype(bf16)                     # (F_in, H*F_hid)

    # Projections of all heads in a single MXU pass (bf16 in, f32 accumulate).
    h_all = jnp.dot(x, w_hid, preferred_element_type=f32)   # (N, H*F_hid)

    a_hid = a_hid_ref[...].astype(f32)                      # (2*H, F_hid)
    a_out = a_out_ref[...].astype(f32)                      # (2, F_out)
    w_out = w_out_ref[...].astype(bf16)                     # (H*F_hid, F_out)

    def _elu(v):
        # clamp the unselected arm so exp() never produces inf
        return jnp.where(v > 0, v, jnp.exp(jnp.minimum(v, 0.0)) - 1.0)

    def _attention(h, a1_row, a2_row):
        # h: (N, F) f32 ; a1_row/a2_row: (1, F) f32
        # f1/f2 as VPU broadcast-mul + row reduction (no 2-lane MXU matmul).
        f1 = jnp.sum(h * a1_row, axis=-1, keepdims=True)    # (N, 1)
        f2 = jnp.sum(h * a2_row, axis=-1, keepdims=True)    # (N, 1)
        e = f1 + f2.T                                       # (N, N)
        # LeakyReLU folded to one vmax (valid for 0 <= alpha <= 1), then the
        # additive adjacency bias replaces compare+select masking.
        e = jnp.maximum(e, alpha * e) + bias
        m = jnp.max(e, axis=-1, keepdims=True)
        p = jnp.exp(e - m)
        inv = pl.reciprocal(jnp.sum(p, axis=-1, keepdims=True), approx=True)
        attn = p * inv
        # TODO(synk): dropout on attn/input skipped — eval-mode semantics
        # (F.dropout with training=False is identity).
        return jnp.dot(attn.astype(bf16), h.astype(bf16),
                       preferred_element_type=f32)

    # Hidden heads (concat=True -> per-head ELU).  The concatenate + output
    # projection is folded into a sum of per-head partial matmuls:
    #   concat_h(elu(hp_h)) @ W_out == sum_h elu(hp_h) @ W_out[h*F:(h+1)*F, :]
    ho = None
    for head in range(num_heads):
        lo = head * f_hid
        h = h_all[:, lo:lo + f_hid]
        hp = _elu(_attention(h,
                             a_hid[2 * head:2 * head + 1, :],
                             a_hid[2 * head + 1:2 * head + 2, :]))
        part = jnp.dot(hp.astype(bf16), w_out[lo:lo + f_hid, :],
                       preferred_element_type=f32)
        ho = part if ho is None else ho + part

    # Output attention layer (concat=False), then the module's outer
    # F.elu + F.log_softmax(dim=2).
    out = _elu(_attention(ho, a_out[0:1, :], a_out[1:2, :]))
    mm = jnp.max(out, axis=-1, keepdims=True)
    z = out - mm
    lse = jnp.log(jnp.sum(jnp.exp(z), axis=-1, keepdims=True))
    o_ref[...] = (z - lse).astype(o_ref.dtype)

    # TODO(synk): for large N (>~1K) add a column-tile grid axis with online
    # (flash-style) softmax so the full (N,N) attention never resides in VMEM
    # (matters most on v7x's 64 MiB VMEM); not needed at these shapes.


def gat_adj_matrix_forward(params, x, adj, *, alpha):
    """Full GAT_adj_matrix forward (eval mode). Grid iterates the batch dim."""
    B, N, F_in = x.shape
    two_h, F_hid = params["a_hid"].shape
    H = two_h // 2
    F_out = params["w_out"].shape[1]

    # Precompute the additive adjacency bias in bf16 (halves adj HBM traffic
    # and removes the in-kernel compare+select).
    bias = jnp.where(adj == 0, jnp.float32(-1e9), jnp.float32(0.0)).astype(
        jnp.bfloat16)

    kernel = functools.partial(_gat_fused_kernel,
                               num_heads=H, f_hid=F_hid, alpha=alpha)
    return pl.pallas_call(
        kernel,
        out_shape=jax.ShapeDtypeStruct((B, N, F_out), jnp.float32),
        grid=(B,),
        in_specs=[
            pl.BlockSpec((None, N, F_in), lambda b: (b, 0, 0)),     # x[b]
            pl.BlockSpec((None, N, N), lambda b: (b, 0, 0)),        # bias[b]
            pl.BlockSpec((F_in, H * F_hid), lambda b: (0, 0)),      # W_all
            pl.BlockSpec((2 * H, F_hid), lambda b: (0, 0)),         # a (heads)
            pl.BlockSpec((H * F_hid, F_out), lambda b: (0, 0)),     # W_out
            pl.BlockSpec((2, F_out), lambda b: (0, 0)),             # a (out)
        ],
        out_specs=pl.BlockSpec((None, N, F_out), lambda b: (b, 0, 0)),
        compiler_params=pltpu.CompilerParams(
            dimension_semantics=("parallel",)),
    )(x, bias, params["w_hid"], params["a_hid"], params["w_out"],
      params["a_out"])


# ----------------------------------------------------------------------------
# Parameter init (deterministic, xavier_uniform with gain=1.414 like the module)
# ----------------------------------------------------------------------------
def _xavier_uniform(key, shape, gain=1.414):
    fan_in, fan_out = shape[0], shape[1]
    bound = gain * (6.0 / (fan_in + fan_out)) ** 0.5
    return jax.random.uniform(key, shape, jnp.float32, -bound, bound)


def init_gat_params(key, dim_in, dim_hid, dim_out, num_heads):
    ws, a_rows = [], []
    for _ in range(num_heads):
        key, kw, k1, k2 = jax.random.split(key, 4)
        ws.append(_xavier_uniform(kw, (dim_in, dim_hid)))
        a_rows.append(_xavier_uniform(k1, (dim_hid, 1))[:, 0])
        a_rows.append(_xavier_uniform(k2, (dim_hid, 1))[:, 0])
    key, kw, k1, k2 = jax.random.split(key, 4)
    w_out = _xavier_uniform(kw, (dim_hid * num_heads, dim_out))
    a1o = _xavier_uniform(k1, (dim_out, 1))[:, 0]
    a2o = _xavier_uniform(k2, (dim_out, 1))[:, 0]
    return {
        "w_hid": jnp.concatenate(ws, axis=1),      # (F_in, H*F_hid)
        "a_hid": jnp.stack(a_rows),                # (2*H, F_hid)
        "w_out": w_out,                            # (H*F_hid, F_out)
        "a_out": jnp.stack([a1o, a2o]),            # (2, F_out)
    }


# ----------------------------------------------------------------------------
# Pure-JAX reference (mirrors the kernel's bf16 MXU inputs / f32 accumulation).
# ----------------------------------------------------------------------------
def _ref_forward(params, x, adj, *, alpha):
    bf16, f32 = jnp.bfloat16, jnp.float32
    bias = jnp.where(adj == 0, jnp.float32(-1e9),
                     jnp.float32(0.0)).astype(bf16).astype(f32)

    def layer(x_in, w, a1, a2):
        h = jnp.einsum("bnf,fk->bnk", x_in.astype(bf16), w.astype(bf16),
                       preferred_element_type=f32)
        f1 = jnp.sum(h * a1[None, None, :], axis=-1, keepdims=True)
        f2 = jnp.sum(h * a2[None, None, :], axis=-1, keepdims=True)
        e = f1 + jnp.swapaxes(f2, 1, 2)
        e = jnp.maximum(e, alpha * e) + bias
        attn = jax.nn.softmax(e, axis=-1)
        return jnp.einsum("bnm,bmk->bnk", attn.astype(bf16), h.astype(bf16),
                          preferred_element_type=f32)

    def elu(v):
        return jnp.where(v > 0, v, jnp.exp(jnp.minimum(v, 0.0)) - 1.0)

    two_h, F_hid = params["a_hid"].shape
    H = two_h // 2
    heads = []
    for hd in range(H):
        w = params["w_hid"][:, hd * F_hid:(hd + 1) * F_hid]
        hp = layer(x, w, params["a_hid"][2 * hd], params["a_hid"][2 * hd + 1])
        heads.append(elu(hp))
    xcat = jnp.concatenate(heads, axis=-1)
    out = layer(xcat, params["w_out"], params["a_out"][0], params["a_out"][1])
    return jax.nn.log_softmax(elu(out), axis=-1)


if __name__ == "__main__":
    # Small shapes consistent with the module's forward.
    B, N = 2, 8
    dim_in, dim_hid, dim_out = 16, 32, 16
    num_heads = 2
    alpha = 0.2  # dropout unused (eval mode)

    key = jax.random.PRNGKey(0)
    k_x, k_adj, k_p = jax.random.split(key, 3)

    x = jax.random.normal(k_x, (B, N, dim_in), jnp.float32)
    # random adjacency with guaranteed self-loops (no fully-masked rows)
    adj = (jax.random.uniform(k_adj, (B, N, N)) > 0.5).astype(jnp.float32)
    adj = jnp.maximum(adj, jnp.eye(N, dtype=jnp.float32)[None])

    params = init_gat_params(k_p, dim_in, dim_hid, dim_out, num_heads)

    out = gat_adj_matrix_forward(params, x, adj, alpha=alpha)
    out = jax.block_until_ready(out)

    ref = _ref_forward(params, x, adj, alpha=alpha)
    assert out.shape == (B, N, dim_out)
    # Tolerance accounts for the kernel's EUP approximate reciprocal in the
    # softmax denominators (the reference uses exact division).
    err = float(jnp.max(jnp.abs(out - ref)))
    assert err < 5e-2, f"mismatch vs reference: max abs err = {err}"

    print("KERNEL_OK")
</pallas_src>

<mosaic_0001>
module attributes {stable_mosaic.version = 11 : i64} {
  func.func @_gat_fused_kernel(%arg0: i32, %arg1: memref<1x8x16xf32, #tpu.memory_space<vmem>>, %arg2: memref<1x8x8xbf16, #tpu.memory_space<vmem>>, %arg3: memref<16x64xf32, #tpu.memory_space<vmem>>, %arg4: memref<4x32xf32, #tpu.memory_space<vmem>>, %arg5: memref<64x16xf32, #tpu.memory_space<vmem>>, %arg6: memref<2x16xf32, #tpu.memory_space<vmem>>, %arg7: memref<1x8x16xf32, #tpu.memory_space<vmem>>) attributes {dimension_semantics = [#tpu.dimension_semantics<parallel>], iteration_bounds = array<i64: 2>, scalar_prefetch = 0 : i64, scratch_operands = 0 : i64, tpu.core_type = #tpu.core_type<tc>, window_params = [{transform_indices = @transform_0, window_bounds = array<i64: 1, 8, 16>}, {transform_indices = @transform_1, window_bounds = array<i64: 1, 8, 8>}, {pipeline_mode = #tpu.pipeline_mode<synchronous>, transform_indices = @transform_2, window_bounds = array<i64: 16, 64>}, {pipeline_mode = #tpu.pipeline_mode<synchronous>, transform_indices = @transform_3, window_bounds = array<i64: 4, 32>}, {pipeline_mode = #tpu.pipeline_mode<synchronous>, transform_indices = @transform_4, window_bounds = array<i64: 64, 16>}, {pipeline_mode = #tpu.pipeline_mode<synchronous>, transform_indices = @transform_5, window_bounds = array<i64: 2, 16>}, {transform_indices = @transform_6, window_bounds = array<i64: 1, 8, 16>}]} {
    %c0 = arith.constant 0 : index
    %c0_0 = arith.constant 0 : index
    %c0_1 = arith.constant 0 : index
    %0 = vector.load %arg2[%c0, %c0_0, %c0_1] : memref<1x8x8xbf16, #tpu.memory_space<vmem>>, vector<1x8x8xbf16>
    %1 = vector.shape_cast %0 : vector<1x8x8xbf16> to vector<8x8xbf16>
    %2 = arith.extf %1 : vector<8x8xbf16> to vector<8x8xf32>
    %c0_2 = arith.constant 0 : index
    %c0_3 = arith.constant 0 : index
    %c0_4 = arith.constant 0 : index
    %3 = vector.load %arg1[%c0_2, %c0_3, %c0_4] : memref<1x8x16xf32, #tpu.memory_space<vmem>>, vector<1x8x16xf32>
    %4 = vector.shape_cast %3 : vector<1x8x16xf32> to vector<8x16xf32>
    %5 = arith.truncf %4 : vector<8x16xf32> to vector<8x16xbf16>
    %c0_5 = arith.constant 0 : index
    %c0_6 = arith.constant 0 : index
    %6 = vector.load %arg3[%c0_5, %c0_6] : memref<16x64xf32, #tpu.memory_space<vmem>>, vector<16x64xf32>
    %7 = arith.truncf %6 : vector<16x64xf32> to vector<16x64xbf16>
    %cst = arith.constant dense<0.000000e+00> : vector<8x64xf32>
    %8 = tpu.matmul %5, %7, %cst {dimension_numbers = #tpu.dot_dimension_numbers<[1], [0], [0], [1], [0, 0, 1, 1], [], []>} : vector<8x16xbf16>, vector<16x64xbf16>, vector<8x64xf32> -> vector<8x64xf32>
    %c0_7 = arith.constant 0 : index
    %c0_8 = arith.constant 0 : index
    %9 = vector.load %arg4[%c0_7, %c0_8] : memref<4x32xf32, #tpu.memory_space<vmem>>, vector<4x32xf32>
    %c0_9 = arith.constant 0 : index
    %c0_10 = arith.constant 0 : index
    %10 = vector.load %arg6[%c0_9, %c0_10] : memref<2x16xf32, #tpu.memory_space<vmem>>, vector<2x16xf32>
    %c0_11 = arith.constant 0 : index
    %c0_12 = arith.constant 0 : index
    %11 = vector.load %arg5[%c0_11, %c0_12] : memref<64x16xf32, #tpu.memory_space<vmem>>, vector<64x16xf32>
    %12 = arith.truncf %11 : vector<64x16xf32> to vector<64x16xbf16>
    %13 = vector.extract_strided_slice %8 {offsets = [0, 0], sizes = [8, 32], strides = [1, 1]} : vector<8x64xf32> to vector<8x32xf32>
    %14 = vector.extract_strided_slice %9 {offsets = [0, 0], sizes = [1, 32], strides = [1, 1]} : vector<4x32xf32> to vector<1x32xf32>
    %15 = vector.extract_strided_slice %9 {offsets = [1, 0], sizes = [1, 32], strides = [1, 1]} : vector<4x32xf32> to vector<1x32xf32>
    %16 = vector.broadcast %14 : vector<1x32xf32> to vector<8x32xf32>
    %17 = arith.mulf %13, %16 : vector<8x32xf32>
    %cst_13 = arith.constant dense<0.000000e+00> : vector<8xf32>
    %18 = vector.multi_reduction <add>, %17, %cst_13 [1] : vector<8x32xf32> to vector<8xf32>
    %19 = vector.shape_cast %18 : vector<8xf32> to vector<8x1xf32>
    %20 = vector.broadcast %15 : vector<1x32xf32> to vector<8x32xf32>
    %21 = arith.mulf %13, %20 : vector<8x32xf32>
    %cst_14 = arith.constant dense<0.000000e+00> : vector<8xf32>
    %22 = vector.multi_reduction <add>, %21, %cst_14 [1] : vector<8x32xf32> to vector<8xf32>
    %23 = vector.shape_cast %22 : vector<8xf32> to vector<8x1xf32>
    %24 = tpu.transpose %23, [1, 0] : vector<8x1xf32> -> vector<1x8xf32>
    %25 = vector.broadcast %19 : vector<8x1xf32> to vector<8x8xf32>
    %26 = vector.broadcast %24 : vector<1x8xf32> to vector<8x8xf32>
    %27 = arith.addf %25, %26 : vector<8x8xf32>
    %cst_15 = arith.constant 2.000000e-01 : f32
    %28 = vector.broadcast %cst_15 : f32 to vector<8x8xf32>
    %29 = arith.mulf %28, %27 : vector<8x8xf32>
    %30 = arith.maximumf %27, %29 : vector<8x8xf32>
    %31 = arith.addf %30, %2 : vector<8x8xf32>
    %cst_16 = arith.constant dense<0xFF800000> : vector<8xf32>
    %32 = vector.multi_reduction <maximumf>, %31, %cst_16 [1] : vector<8x8xf32> to vector<8xf32>
    %33 = vector.shape_cast %32 : vector<8xf32> to vector<8x1xf32>
    %34 = vector.broadcast %33 : vector<8x1xf32> to vector<8x8xf32>
    %35 = arith.subf %31, %34 : vector<8x8xf32>
    %36 = math.exp %35 : vector<8x8xf32>
    %cst_17 = arith.constant dense<0.000000e+00> : vector<8xf32>
    %37 = vector.multi_reduction <add>, %36, %cst_17 [1] : vector<8x8xf32> to vector<8xf32>
    %38 = vector.shape_cast %37 : vector<8xf32> to vector<8x1xf32>
    %39 = tpu.reciprocal %38 {approx = true} : vector<8x1xf32> -> vector<8x1xf32>
    %40 = vector.broadcast %39 : vector<8x1xf32> to vector<8x8xf32>
    %41 = arith.mulf %36, %40 : vector<8x8xf32>
    %42 = arith.truncf %41 : vector<8x8xf32> to vector<8x8xbf16>
    %43 = arith.truncf %13 : vector<8x32xf32> to vector<8x32xbf16>
    %cst_18 = arith.constant dense<0.000000e+00> : vector<8x32xf32>
    %44 = tpu.matmul %42, %43, %cst_18 {dimension_numbers = #tpu.dot_dimension_numbers<[1], [0], [0], [1], [0, 0, 1, 1], [], []>} : vector<8x8xbf16>, vector<8x32xbf16>, vector<8x32xf32> -> vector<8x32xf32>
    %cst_19 = arith.constant 0.000000e+00 : f32
    %45 = vector.broadcast %cst_19 : f32 to vector<8x32xf32>
    %46 = arith.cmpf ogt, %44, %45 : vector<8x32xf32>
    %cst_20 = arith.constant 0.000000e+00 : f32
    %47 = vector.broadcast %cst_20 : f32 to vector<8x32xf32>
    %48 = arith.minimumf %44, %47 : vector<8x32xf32>
    %49 = math.exp %48 : vector<8x32xf32>
    %cst_21 = arith.constant 1.000000e+00 : f32
    %50 = vector.broadcast %cst_21 : f32 to vector<8x32xf32>
    %51 = arith.subf %49, %50 : vector<8x32xf32>
    %52 = arith.select %46, %44, %51 : vector<8x32xi1>, vector<8x32xf32>
    %53 = arith.truncf %52 : vector<8x32xf32> to vector<8x32xbf16>
    %54 = vector.extract_strided_slice %12 {offsets = [0, 0], sizes = [32, 16], strides = [1, 1]} : vector<64x16xbf16> to vector<32x16xbf16>
    %cst_22 = arith.constant dense<0.000000e+00> : vector<8x16xf32>
    %55 = tpu.matmul %53, %54, %cst_22 {dimension_numbers = #tpu.dot_dimension_numbers<[1], [0], [0], [1], [0, 0, 1, 1], [], []>} : vector<8x32xbf16>, vector<32x16xbf16>, vector<8x16xf32> -> vector<8x16xf32>
    %56 = vector.extract_strided_slice %8 {offsets = [0, 32], sizes = [8, 32], strides = [1, 1]} : vector<8x64xf32> to vector<8x32xf32>
    %57 = vector.extract_strided_slice %9 {offsets = [2, 0], sizes = [1, 32], strides = [1, 1]} : vector<4x32xf32> to vector<1x32xf32>
    %58 = vector.extract_strided_slice %9 {offsets = [3, 0], sizes = [1, 32], strides = [1, 1]} : vector<4x32xf32> to vector<1x32xf32>
    %59 = vector.broadcast %57 : vector<1x32xf32> to vector<8x32xf32>
    %60 = arith.mulf %56, %59 : vector<8x32xf32>
    %cst_23 = arith.constant dense<0.000000e+00> : vector<8xf32>
    %61 = vector.multi_reduction <add>, %60, %cst_23 [1] : vector<8x32xf32> to vector<8xf32>
    %62 = vector.shape_cast %61 : vector<8xf32> to vector<8x1xf32>
    %63 = vector.broadcast %58 : vector<1x32xf32> to vector<8x32xf32>
    %64 = arith.mulf %56, %63 : vector<8x32xf32>
    %cst_24 = arith.constant dense<0.000000e+00> : vector<8xf32>
    %65 = vector.multi_reduction <add>, %64, %cst_24 [1] : vector<8x32xf32> to vector<8xf32>
    %66 = vector.shape_cast %65 : vector<8xf32> to vector<8x1xf32>
    %67 = tpu.transpose %66, [1, 0] : vector<8x1xf32> -> vector<1x8xf32>
    %68 = vector.broadcast %62 : vector<8x1xf32> to vector<8x8xf32>
    %69 = vector.broadcast %67 : vector<1x8xf32> to vector<8x8xf32>
    %70 = arith.addf %68, %69 : vector<8x8xf32>
    %cst_25 = arith.constant 2.000000e-01 : f32
    %71 = vector.broadcast %cst_25 : f32 to vector<8x8xf32>
    %72 = arith.mulf %71, %70 : vector<8x8xf32>
    %73 = arith.maximumf %70, %72 : vector<8x8xf32>
    %74 = arith.addf %73, %2 : vector<8x8xf32>
    %cst_26 = arith.constant dense<0xFF800000> : vector<8xf32>
    %75 = vector.multi_reduction <maximumf>, %74, %cst_26 [1] : vector<8x8xf32> to vector<8xf32>
    %76 = vector.shape_cast %75 : vector<8xf32> to vector<8x1xf32>
    %77 = vector.broadcast %76 : vector<8x1xf32> to vector<8x8xf32>
    %78 = arith.subf %74, %77 : vector<8x8xf32>
    %79 = math.exp %78 : vector<8x8xf32>
    %cst_27 = arith.constant dense<0.000000e+00> : vector<8xf32>
    %80 = vector.multi_reduction <add>, %79, %cst_27 [1] : vector<8x8xf32> to vector<8xf32>
    %81 = vector.shape_cast %80 : vector<8xf32> to vector<8x1xf32>
    %82 = tpu.reciprocal %81 {approx = true} : vector<8x1xf32> -> vector<8x1xf32>
    %83 = vector.broadcast %82 : vector<8x1xf32> to vector<8x8xf32>
    %84 = arith.mulf %79, %83 : vector<8x8xf32>
    %85 = arith.truncf %84 : vector<8x8xf32> to vector<8x8xbf16>
    %86 = arith.truncf %56 : vector<8x32xf32> to vector<8x32xbf16>
    %cst_28 = arith.constant dense<0.000000e+00> : vector<8x32xf32>
    %87 = tpu.matmul %85, %86, %cst_28 {dimension_numbers = #tpu.dot_dimension_numbers<[1], [0], [0], [1], [0, 0, 1, 1], [], []>} : vector<8x8xbf16>, vector<8x32xbf16>, vector<8x32xf32> -> vector<8x32xf32>
    %cst_29 = arith.constant 0.000000e+00 : f32
    %88 = vector.broadcast %cst_29 : f32 to vector<8x32xf32>
    %89 = arith.cmpf ogt, %87, %88 : vector<8x32xf32>
    %cst_30 = arith.constant 0.000000e+00 : f32
    %90 = vector.broadcast %cst_30 : f32 to vector<8x32xf32>
    %91 = arith.minimumf %87, %90 : vector<8x32xf32>
    %92 = math.exp %91 : vector<8x32xf32>
    %cst_31 = arith.constant 1.000000e+00 : f32
    %93 = vector.broadcast %cst_31 : f32 to vector<8x32xf32>
    %94 = arith.subf %92, %93 : vector<8x32xf32>
    %95 = arith.select %89, %87, %94 : vector<8x32xi1>, vector<8x32xf32>
    %96 = arith.truncf %95 : vector<8x32xf32> to vector<8x32xbf16>
    %97 = vector.extract_strided_slice %12 {offsets = [32, 0], sizes = [32, 16], strides = [1, 1]} : vector<64x16xbf16> to vector<32x16xbf16>
    %cst_32 = arith.constant dense<0.000000e+00> : vector<8x16xf32>
    %98 = tpu.matmul %96, %97, %cst_32 {dimension_numbers = #tpu.dot_dimension_numbers<[1], [0], [0], [1], [0, 0, 1, 1], [], []>} : vector<8x32xbf16>, vector<32x16xbf16>, vector<8x16xf32> -> vector<8x16xf32>
    %99 = arith.addf %55, %98 : vector<8x16xf32>
    %100 = vector.extract_strided_slice %10 {offsets = [0, 0], sizes = [1, 16], strides = [1, 1]} : vector<2x16xf32> to vector<1x16xf32>
    %101 = vector.extract_strided_slice %10 {offsets = [1, 0], sizes = [1, 16], strides = [1, 1]} : vector<2x16xf32> to vector<1x16xf32>
    %102 = vector.broadcast %100 : vector<1x16xf32> to vector<8x16xf32>
    %103 = arith.mulf %99, %102 : vector<8x16xf32>
    %cst_33 = arith.constant dense<0.000000e+00> : vector<8xf32>
    %104 = vector.multi_reduction <add>, %103, %cst_33 [1] : vector<8x16xf32> to vector<8xf32>
    %105 = vector.shape_cast %104 : vector<8xf32> to vector<8x1xf32>
    %106 = vector.broadcast %101 : vector<1x16xf32> to vector<8x16xf32>
    %107 = arith.mulf %99, %106 : vector<8x16xf32>
    %cst_34 = arith.constant dense<0.000000e+00> : vector<8xf32>
    %108 = vector.multi_reduction <add>, %107, %cst_34 [1] : vector<8x16xf32> to vector<8xf32>
    %109 = vector.shape_cast %108 : vector<8xf32> to vector<8x1xf32>
    %110 = tpu.transpose %109, [1, 0] : vector<8x1xf32> -> vector<1x8xf32>
    %111 = vector.broadcast %105 : vector<8x1xf32> to vector<8x8xf32>
    %112 = vector.broadcast %110 : vector<1x8xf32> to vector<8x8xf32>
    %113 = arith.addf %111, %112 : vector<8x8xf32>
    %cst_35 = arith.constant 2.000000e-01 : f32
    %114 = vector.broadcast %cst_35 : f32 to vector<8x8xf32>
    %115 = arith.mulf %114, %113 : vector<8x8xf32>
    %116 = arith.maximumf %113, %115 : vector<8x8xf32>
    %117 = arith.addf %116, %2 : vector<8x8xf32>
    %cst_36 = arith.constant dense<0xFF800000> : vector<8xf32>
    %118 = vector.multi_reduction <maximumf>, %117, %cst_36 [1] : vector<8x8xf32> to vector<8xf32>
    %119 = vector.shape_cast %118 : vector<8xf32> to vector<8x1xf32>
    %120 = vector.broadcast %119 : vector<8x1xf32> to vector<8x8xf32>
    %121 = arith.subf %117, %120 : vector<8x8xf32>
    %122 = math.exp %121 : vector<8x8xf32>
    %cst_37 = arith.constant dense<0.000000e+00> : vector<8xf32>
    %123 = vector.multi_reduction <add>, %122, %cst_37 [1] : vector<8x8xf32> to vector<8xf32>
    %124 = vector.shape_cast %123 : vector<8xf32> to vector<8x1xf32>
    %125 = tpu.reciprocal %124 {approx = true} : vector<8x1xf32> -> vector<8x1xf32>
    %126 = vector.broadcast %125 : vector<8x1xf32> to vector<8x8xf32>
    %127 = arith.mulf %122, %126 : vector<8x8xf32>
    %128 = arith.truncf %127 : vector<8x8xf32> to vector<8x8xbf16>
    %129 = arith.truncf %99 : vector<8x16xf32> to vector<8x16xbf16>
    %cst_38 = arith.constant dense<0.000000e+00> : vector<8x16xf32>
    %130 = tpu.matmul %128, %129, %cst_38 {dimension_numbers = #tpu.dot_dimension_numbers<[1], [0], [0], [1], [0, 0, 1, 1], [], []>} : vector<8x8xbf16>, vector<8x16xbf16>, vector<8x16xf32> -> vector<8x16xf32>
    %cst_39 = arith.constant 0.000000e+00 : f32
    %131 = vector.broadcast %cst_39 : f32 to vector<8x16xf32>
    %132 = arith.cmpf ogt, %130, %131 : vector<8x16xf32>
    %cst_40 = arith.constant 0.000000e+00 : f32
    %133 = vector.broadcast %cst_40 : f32 to vector<8x16xf32>
    %134 = arith.minimumf %130, %133 : vector<8x16xf32>
    %135 = math.exp %134 : vector<8x16xf32>
    %cst_41 = arith.constant 1.000000e+00 : f32
    %136 = vector.broadcast %cst_41 : f32 to vector<8x16xf32>
    %137 = arith.subf %135, %136 : vector<8x16xf32>
    %138 = arith.select %132, %130, %137 : vector<8x16xi1>, vector<8x16xf32>
    %cst_42 = arith.constant dense<0xFF800000> : vector<8xf32>
    %139 = vector.multi_reduction <maximumf>, %138, %cst_42 [1] : vector<8x16xf32> to vector<8xf32>
    %140 = vector.shape_cast %139 : vector<8xf32> to vector<8x1xf32>
    %141 = vector.broadcast %140 : vector<8x1xf32> to vector<8x16xf32>
    %142 = arith.subf %138, %141 : vector<8x16xf32>
    %143 = math.exp %142 : vector<8x16xf32>
    %cst_43 = arith.constant dense<0.000000e+00> : vector<8xf32>
    %144 = vector.multi_reduction <add>, %143, %cst_43 [1] : vector<8x16xf32> to vector<8xf32>
    %145 = vector.shape_cast %144 : vector<8xf32> to vector<8x1xf32>
    %146 = math.log %145 : vector<8x1xf32>
    %147 = vector.broadcast %146 : vector<8x1xf32> to vector<8x16xf32>
    %148 = arith.subf %142, %147 : vector<8x16xf32>
    %c0_44 = arith.constant 0 : index
    %c0_45 = arith.constant 0 : index
    %c0_46 = arith.constant 0 : index
    %149 = vector.load %arg7[%c0_44, %c0_45, %c0_46] : memref<1x8x16xf32, #tpu.memory_space<vmem>>, vector<1x8x16xf32>
    %150 = vector.shape_cast %149 : vector<1x8x16xf32> to vector<8x16xf32>
    %151 = vector.shape_cast %148 : vector<8x16xf32> to vector<1x8x16xf32>
    tpu.vector_store %arg7[%c0_44, %c0_45, %c0_46], %151 {strides = array<i32>} : memref<1x8x16xf32, #tpu.memory_space<vmem>>, vector<1x8x16xf32>,
    return
  }
  func.func @transform_0(%arg0: i32) -> (i32, i32, i32) {
    %c0_i32 = arith.constant 0 : i32
    %c0_i32_0 = arith.constant 0 : i32
    %c0_i32_1 = arith.constant 0 : i32
    return %arg0, %c0_i32, %c0_i32_0 : i32, i32, i32
  }
  func.func @transform_1(%arg0: i32) -> (i32, i32, i32) {
    %c0_i32 = arith.constant 0 : i32
    %c0_i32_0 = arith.constant 0 : i32
    %c0_i32_1 = arith.constant 0 : i32
    return %arg0, %c0_i32, %c0_i32_0 : i32, i32, i32
  }
  func.func @transform_2(%arg0: i32) -> (i32, i32) {
    %c0_i32 = arith.constant 0 : i32
    %c0_i32_0 = arith.constant 0 : i32
    %c0_i32_1 = arith.constant 0 : i32
    return %c0_i32, %c0_i32_0 : i32, i32
  }
  func.func @transform_3(%arg0: i32) -> (i32, i32) {
    %c0_i32 = arith.constant 0 : i32
    %c0_i32_0 = arith.constant 0 : i32
    %c0_i32_1 = arith.constant 0 : i32
    return %c0_i32, %c0_i32_0 : i32, i32
  }
  func.func @transform_4(%arg0: i32) -> (i32, i32) {
    %c0_i32 = arith.constant 0 : i32
    %c0_i32_0 = arith.constant 0 : i32
    %c0_i32_1 = arith.constant 0 : i32
    return %c0_i32, %c0_i32_0 : i32, i32
  }
  func.func @transform_5(%arg0: i32) -> (i32, i32) {
    %c0_i32 = arith.constant 0 : i32
    %c0_i32_0 = arith.constant 0 : i32
    %c0_i32_1 = arith.constant 0 : i32
    return %c0_i32, %c0_i32_0 : i32, i32
  }
  func.func @transform_6(%arg0: i32) -> (i32, i32, i32) {
    %c0_i32 = arith.constant 0 : i32
    %c0_i32_0 = arith.constant 0 : i32
    %c0_i32_1 = arith.constant 0 : i32
    return %arg0, %c0_i32, %c0_i32_0 : i32, i32, i32
  }
}

</mosaic_0001>

<bundles_post_ra>
// kernel: tpu_custom_call.1
= control target key start
LH: loop header
LB: loop body
LE: loop exit
PB: predicated region body
PF: predicated region fallthrough
CT: control target
= control target key end

     0   :  { %11 = vsyncpa [#allocation3], 0  ;;  %s1086_s0 = inlined_call_operand.vmem [shape: f32[2,8,16], index: 0, kind: input, shape index: {}]   ;;  %s1087_s1 = inlined_call_operand.vmem [shape: bf16[2,8,8], index: 1, kind: input, shape index: {}]   ;;  %s1088_s2 = inlined_call_operand.vmem [shape: f32[16,64], index: 2, kind: input, shape index: {}]   ;;  %s1089_s3 = inlined_call_operand.vmem [shape: f32[4,32], index: 3, kind: input, shape index: {}]   ;;  %s1090_s4 = inlined_call_operand.vmem [shape: f32[64,16], index: 4, kind: input, shape index: {}]   ;;  %s1091_s5 = inlined_call_operand.vmem [shape: f32[2,16], index: 5, kind: input, shape index: {}]   ;;  %s1092_s6 = inlined_call_operand.hbm [shape: f32[2,8,16], index: 6, kind: output, shape index: {}]  }
   0x1   :  { %13 = vsyncpa [#allocation3 + $0x1], 0  ;;  %s926_s21 = smov 0   ;;  %s928_s22 = smov 0  }
   0x2   :  { %s930_s23 = smov 0   ;;  %s932_s24 = smov 0  }
   0x3 LB: > { %s947_s25 = sadd.s32 4294967295, %s887_s24   ;;  %s741_s26 = sadd.s32 4294967294, %s887_s24   ;;  %s887_s24 = sphi %s932_s24, %s1098_s24   ;;  %s883_s23 = sphi %s930_s23, %s1097_s23   ;;  %s879_s22 = sphi %s928_s22, %s1096_s22   ;;  %s875_s21 = sphi %s926_s21, %s1095_s21  }
   0x4   : > { %s951_s27 = sadd.s32 1, %s887_s24   ;;  %s162_s28 = sadd.s32 1, %s883_s23 }
   0x5   : > { %s159_s29 = ssub.s32 %s887_s24, %s951_s27  ;;  %p172_p0 = scmp.ne.s32.totalorder %s883_s23, %s879_s22 }
   0x6   : > { %p160_p1 = scmp.eq.s32.totalorder %s159_s29, 0  ;;  %p173_p2 = scmp.eq.s32.totalorder %s947_s25, 1 }
   0x7   : > { %p178_p3 = scmp.ne.s32.totalorder %s879_s22, %s875_s21  ;;  %p179_p4 = scmp.eq.s32.totalorder %s741_s26, 1 }
   0x8   : > { %s962_s30 = scalar_select %p160_p1, %s883_s23, %s162_s28  }
   0x9   : > { %p964_p5 = por %p173_p2, %p172_p0  ;;  %p968_p6 = por %p179_p4, %p178_p3 }
   0xa   : > { %p744_p7 = scmp.ge.s32.totalorder %s887_s24, 1  ;;  %p223_p8 = scmp.lt.s32.totalorder %s887_s24, 3 }
   0xc   : > { %p224_p9 = pnand %p744_p7, %p223_p8 }
   0xd   : > { %p256_p10 = scmp.lt.s32.totalorder (!%p224_p9), %s947_s25, 1  ;;  %s889_s16 = smov (!%p224_p9), 32  }
   0xe   : > { %227 = sbr.rel (%p224_p9) target bundleno = 2037 (0x7f5), region = 44  ;;  %s890_s26 = smov (!%p224_p9), 96  }
   0xf   : > { %s253_s14 = sand.u32 (!%p224_p9), 1, %s879_s22   ;;  %s845_s12 = scalar_lea.hbm (!%p224_p9), %s1092_s6, 16 }
  0x10   : > { %s655_s29 = scalar_lea.sflag (!%p224_p9), [#allocation3], %s253_s14 }
  0x13   : > { %v269_v0 = vld [vmem:[%s1088_s2] sm:$0xff]  ;;  %v270_v1 = vld [vmem:[%s1088_s2 + $0x8] sm:$0xff]  ;;  %s985_s15 = scalar_select %p256_p10, %s947_s25, 1  ;;  %vm272_vm0 = vcmask 130048   ;;  %vm372_vm1 = vcmask 1043456   ;;  %vm309_vm2 = vcmask 261120  }
  0x14   : > { %v289_v2 = vld [vmem:[%s1089_s3] sm:$0xf]  ;;  %v271_v3 = vpack.c.bf16 %v270_v1, %v269_v0  ;;  %vm355_vm3 = vcmask 64512  }
  0x15   : > { %v409_v4 = vperm.slane %v289_v2, 3  ;;  %s746_s17 = sshll.u32 %s985_s15, 3  ;;  %v396_v7 = vperm.slane %v289_v2, 2  ;;  %v313_v9 = vperm.slane %v289_v2, 1  ;;  %v307_v19 = vperm.slane %v289_v2, 0  ;;  %s747_s28 = sshll.u32 %s985_s15, 2 }
  0x16   : > { %283 = vmatpush.bf16.msra.mxu0 %v271_v3  ;;  %s259_s20 = scalar_lea.vmem %s1086_s0, %s746_s17  ;;  %s263_s10 = scalar_lea.vmem %s1087_s1, %s747_s28  ;;  %v293_v2 = vld [vmem:[%s1090_s4 + $0x10] sm:$0xff]  ;;  %v294_v3 = vld [vmem:[%s1090_s4 + $0x18] sm:$0xff] }
  0x17   : > { %411 = vrot.lane.b32.xlu0 %v409_v4, %s889_s16  ;;  %v267_v5 = vld [vmem:[%s259_s20] sm:$0xff]  ;;  %v301_v4 = vpack.c.bf16 %v293_v2, %v293_v2  ;;  %s745_s15 = sshll.u32 %s253_s14, 3 }
  0x18   : > { %v268_v6 = vpack.c.bf16 %v267_v5, %v267_v5  ;;  %v265_v31 = vld [vmem:[%s263_s10] sm:$0xf]  ;;  %v302_v5 = vpack.c.bf16 %v294_v3, %v294_v3  ;;  %s255_s20 = scalar_lea.vmem [#allocation2], %s745_s15 }
  0x19   : > { %v1003_v34 = vunpack.c.l.bf16 %v265_v31  ;;  %v296_v31 = vld [vmem:[%s1090_s4 + $0x28] sm:$0xff] }
  0x1a   : > { %748 = vmatmul.msk.bf16.vlgmr.msra.gmra.mxu0 %vm272_vm0, %v268_v6  ;;  %v534_v6 = vunpack.c.l.b16 %v301_v4 }
  0x1f   : > { %398 = vrot.lane.b32.xlu0 %v396_v7, %s889_s16  ;;  %v535_v7 = vunpack.c.l.b16 %v302_v5  ;;  %s758_s16 = sshll.u32 %s947_s25, 3 }
  0x20   : > { %s665_s19 = scalar_lea.hbm %s1092_s6, %s758_s16 }
  0x21   : > { %s669_s28 = sshll.u32 %s665_s19, 4  ;;  %s670_s28 = int_to_ptr.hbm [resolvable:$true] %s669_s28 }
  0x22   : > { %s839_s9 = sshra.s32 %s670_s28, 4  ;;  %s840_s9 = int_to_ptr.hbm [resolvable:$true] %s839_s9 }
  0x23   : > { %s841_s10 = scalar_lea.hbm %s840_s9, 8  ;;  %p846_p0 = scmp.lt.s32.totalorder %s840_s9, %s1092_s6 }
  0x24   : > { %p842_p11 = scmp.ne.s32.totalorder %s840_s9, %s841_s10  ;;  %p847_p1 = scmp.lt.s32.totalorder %s845_s12, %s841_s10 }
  0x26   : > { %p843_p12 = pnand %p842_p11, %p964_p5  ;;  %p848_p2 = por %p847_p1, %p846_p0 }
  0x28   : > { %p844_p13 = pneg %p843_p12 }
  0x2a   : > { %p849_p3 = pnand %p848_p2, %p844_p13 }
  0x89   : > { %v412_v8 = vpop.permute.xlu0 %411 }
  0x91   : > { %v399_v16 = vpop.permute.xlu0 %398 }
  0x97   : > { %v285_v10 = vpop.f32.mrf.mxu0 }
  0x98   : > { %v414_v11 = vmul.f32 %v412_v8, %v285_v10  ;;  %v368_v12 = vpack.c.bf16 %v285_v10, %v285_v10  ;;  %v314_v13 = vmul.f32 %v313_v9, %v285_v10  ;;  %v401_v18 = vmul.f32 %v399_v16, %v285_v10  ;;  %v291_v8 = vld [vmem:[%s1090_s4] sm:$0xff]  ;;  %v292_v9 = vld [vmem:[%s1090_s4 + $0x8] sm:$0xff] }
  0x99   : > { %v308_v20 = vmul.f32 %v307_v19, %v285_v10  ;;  %v537_v10 = vpack.c.b16 %v535_v7, %v534_v6 }
  0x9a   : > { %416 = vrot.lane.b32.xlu1 %v414_v11, %s890_s26  ;;  %v374_v14 = vsel %vm372_vm1, %v368_v12, 0  ;;  %v315_v15 = vsel %vm309_vm2, %v314_v13, 0.0  ;;  %v299_v11 = vpack.c.bf16 %v291_v8, %v291_v8 }
  0x9b   : > { %383 = vmatpush.bf16.msra.mxu1 %v374_v14  ;;  %316 = vadd.xlane.f32.xlu2 %v315_v15  ;;  %v310_v21 = vsel %vm309_vm2, %v308_v20, 0.0 }
  0x9c   : > { %549 = vmatpush.bf16.msrb.mxu0 %v537_v10  ;;  %v532_v13 = vunpack.c.l.b16 %v299_v11 }
  0x9f   : > { %v287_v17 = vpop.f32.mrf.mxu0 }
  0xa2   : > { %403 = vrot.lane.b32.xlu1 %v401_v18, %s890_s26 }
  0xcc   : > { %311 = vadd.xlane.f32.xlu1 %v310_v21 }
 0x10c   : > { %v417_v22 = vpop.permute.xlu1 %416 }
 0x10d   : > { %v419_v23 = vsel %vm309_vm2, %v417_v22, 0.0 }
 0x10e   : > { %420 = vadd.xlane.f32.xlu2 %v419_v23  ;;  %v317_v26 = vpop.xlane.xlu2 %316 }
 0x114   : > { %v404_v24 = vpop.permute.xlu1 %403 }
 0x115   : > { %v406_v25 = vsel %vm309_vm2, %v404_v24, 0.0  ;;  %v297_v24 = vld [vmem:[%s1090_s4 + $0x30] sm:$0xff] }
 0x116   : > { %407 = vadd.xlane.f32.xlu0 %v406_v25  ;;  %v298_v25 = vld [vmem:[%s1090_s4 + $0x38] sm:$0xff] }
 0x137   : > { %318 = vxpose.xlu2.b32.start.end [1/1] (short) (narrow) %v317_v26, 8  ;;  %v305_v26 = vpack.c.bf16 %v297_v24, %v297_v24 }
 0x13f   : > { %v312_v30 = vpop.xlane.xlu1 %311 }
 0x181   : > { %v421_v27 = vpop.xlane.xlu2 %420 }
 0x182   : > { %422 = vxpose.xlu2.b32.start.end [1/1] (short) (narrow) %v421_v27, 8  ;;  %v306_v27 = vpack.c.bf16 %v298_v25, %v298_v25 }
 0x189   : > { %v408_v40 = vpop.xlane.xlu0 %407 }
 0x1d0   : > { %v334_v28 = vpop.trf.xlu2 }
 0x1d1   : > { %v350_v29 = vperm.slane %v334_v28, 0  ;;  %v506_v28 = vunpack.c.l.b16 %v305_v26 }
 0x1d3   : > { %v351_v32 = vadd.f32 %v350_v29, %v312_v30  ;;  %v507_v29 = vunpack.c.l.b16 %v306_v27  ;;  %v295_v30 = vld [vmem:[%s1090_s4 + $0x20] sm:$0xff] }
 0x1d5   : > { %v352_v33 = vmul.f32 0.2, %v351_v32 }
 0x1d7   : > { %v353_v35 = vmax.f32 %v351_v32, %v352_v33  ;;  %v509_v32 = vpack.c.b16 %v507_v29, %v506_v28  ;;  %v303_v33 = vpack.c.bf16 %v295_v30, %v295_v30 }
 0x1d9   : > { %v354_v36 = vadd.f32 %v353_v35, %v1003_v34  ;;  %v304_v35 = vpack.c.bf16 %v296_v31, %v296_v31  ;;  %521 = vmatpush.bf16.msra.mxu3 %v509_v32 }
 0x1db   : > { %v356_v37 = vsel %vm355_vm3, %v354_v36, -inf }
 0x1dc   : > { %357 = vmax.xlane.f32.xlu1 %v356_v37  ;;  %v505_v37 = vunpack.c.l.b16 %v304_v35 }
 0x21b   : > { %v438_v38 = vpop.trf.xlu2 }
 0x21c   : > { %v454_v39 = vperm.slane %v438_v38, 0 }
 0x21e   : > { %v455_v41 = vadd.f32 %v454_v39, %v408_v40 }
 0x220   : > { %v456_v42 = vmul.f32 0.2, %v455_v41 }
 0x222   : > { %v457_v43 = vmax.f32 %v455_v41, %v456_v42 }
 0x224   : > { %v458_v44 = vadd.f32 %v457_v43, %v1003_v34 }
 0x226   : > { %v459_v45 = vsel %vm355_vm3, %v458_v44, -inf }
 0x227   : > { %460 = vmax.xlane.f32.xlu0 %v459_v45 }
 0x23b   : > { %472 = vrot.lane.b32.xlu0 %v368_v12, %s890_s26  ;;  %v300_v12 = vpack.c.bf16 %v292_v9, %v292_v9  ;;  %s667_s26 = sshll.u32 %s255_s20, 4  ;;  %s668_s26 = int_to_ptr.vmem [resolvable:$true] %s667_s26 }
 0x23d   : > { %v533_v14 = vunpack.c.l.b16 %v300_v12 }
 0x23f   : > { %v536_v15 = vpack.c.b16 %v533_v14, %v532_v13 }
 0x241   : > { %550 = vmatpush.bf16.msrb.mxu0 %v536_v15 }
 0x24f   : > { %v358_v46 = vpop.xlane.xlu1 %357 }
 0x250   : > { %v359_v47 = vsub.f32 %v354_v36, %v358_v46  ;;  %v504_v36 = vunpack.c.l.b16 %v303_v33 }
 0x252   : > { %v360_v48 = vmul.f32 1.442695, %v359_v47  ;;  %v508_v38 = vpack.c.b16 %v505_v37, %v504_v36 }
 0x254   : > { %803 = vpow2.f32 %v360_v48  ;;  %522 = vmatpush.bf16.msra.mxu3 %v508_v38 }
 0x25a   : > { %v804_v49 = vpop.eup %803 }
 0x25b   : > { %v362_v50 = vsel %vm355_vm3, %v804_v49, 0.0 }
 0x25c   : > { %363 = vadd.xlane.f32.xlu1 %v362_v50 }
 0x29a   : > { %v461_v51 = vpop.xlane.xlu0 %460 }
 0x29b   : > { %v462_v52 = vsub.f32 %v458_v44, %v461_v51 }
 0x29d   : > { %v463_v53 = vmul.f32 1.442695, %v462_v52 }
 0x29f   : > { %805 = vpow2.f32 %v463_v53 }
 0x2a5   : > { %v806_v54 = vpop.eup %805 }
 0x2a6   : > { %v465_v55 = vsel %vm355_vm3, %v806_v54, 0.0 }
 0x2a7   : > { %466 = vadd.xlane.f32.xlu2 %v465_v55 }
 0x2ad   : > { %v473_v56 = vpop.permute.xlu0 %472 }
 0x2ae   : > { %v478_v57 = vsel %vm372_vm1, %v473_v56, 0 }
 0x2af   : > { %487 = vmatpush.bf16.msra.mxu2 %v478_v57 }
 0x2cf   : > { %v364_v58 = vpop.xlane.xlu1 %363 }
 0x2d0   : > { %807 = vrcp.f32 %v364_v58 }
 0x2d6   : > { %v808_v59 = vpop.eup %807 }
 0x2d7   : > { %v366_v60 = vmul.f32 %v808_v59, %v804_v49  ;;  %v290_v49 = vld [vmem:[%s1091_s5] sm:$0x3] }
 0x2d8   : > { %v561_v50 = vperm.slane %v290_v49, 1  ;;  %v556_v57 = vperm.slane %v290_v49, 0 }
 0x2d9   : > { %v367_v61 = vpack.c.bf16 %v366_v60, %v366_v60 }
 0x2db   : > { %749 = vmatmul.msk.bf16.vlgmr.msra.gmra.mxu1 %vm355_vm3, %v367_v61 }
 0x31a   : > { %v467_v62 = vpop.xlane.xlu2 %466 }
 0x31b   : > { %809 = vrcp.f32 %v467_v62 }
 0x321   : > { %v810_v63 = vpop.eup %809 }
 0x322   : > { %v469_v0 = vmul.f32 %v810_v63, %v806_v54 }
 0x324   : > { %v470_v1 = vpack.c.bf16 %v469_v0, %v469_v0 }
 0x326   : > { %751 = vmatmul.msk.bf16.vlgmr.msra.gmra.mxu2 %vm355_vm3, %v470_v1 }
 0x358   : > { %v385_v16 = vpop.f32.mrf.mxu1 }
 0x359   : > { %v390_v17 = vmin.f32 %v385_v16, 0.0  ;;  %vm389_vm4 = vcmp.gt.f32.partialorder %v385_v16, 0.0 }
 0x35b   : > { %v391_v18 = vmul.f32 1.442695, %v390_v17 }
 0x35d   : > { %811 = vpow2.f32 %v391_v18 }
 0x360   : > { %v387_v19 = vpop.f32.mrf.mxu1 }
 0x363   : > { %v812_v20 = vpop.eup %811 }
 0x364   : > { %v750_v21 = vadd.f32 -1.0, %v812_v20 }
 0x366   : > { %v394_v22 = vsel %vm389_vm4, %v385_v16, %v750_v21 }
 0x367   : > { %v395_v23 = vpack.c.bf16 %v394_v22, %v394_v22 }
 0x369   : > { %754 = vmatmul.msk.bf16.vlgmr.msrb.gmra.mxu0 %vm309_vm2, %v395_v23 }
 0x3a9   : > { %v489_v39 = vpop.f32.mrf.mxu2 }
 0x3aa   : > { %v494_v40 = vmin.f32 %v489_v39, 0.0  ;;  %vm493_vm5 = vcmp.gt.f32.partialorder %v489_v39, 0.0 }
 0x3ac   : > { %v495_v41 = vmul.f32 1.442695, %v494_v40 }
 0x3ae   : > { %813 = vpow2.f32 %v495_v41 }
 0x3b1   : > { %v491_v42 = vpop.f32.mrf.mxu2 }
 0x3b4   : > { %v814_v43 = vpop.eup %813 }
 0x3b5   : > { %v752_v44 = vadd.f32 -1.0, %v814_v43 }
 0x3b7   : > { %v498_v45 = vsel %vm493_vm5, %v489_v39, %v752_v44 }
 0x3b8   : > { %v499_v46 = vpack.c.bf16 %v498_v45, %v498_v45 }
 0x3ba   : > { %753 = vmatmul.msk.bf16.vlgmr.msra.gmra.mxu3 %vm309_vm2, %v499_v46 }
 0x3e6   : > { %v552_v47 = vpop.f32.mrf.mxu0 }
 0x3ee   : > { %v554_v48 = vpop.f32.mrf.mxu0 }
 0x43d   : > { %v524_v51 = vpop.f32.mrf.mxu3 }
 0x43e   : > { %v553_v52 = vadd.f32 %v552_v47, %v524_v51 }
 0x440   : > { %v615_v53 = vpack.c.bf16 %v553_v52, %v553_v52  ;;  %v562_v54 = vmul.f32 %v561_v50, %v553_v52  ;;  %v557_v59 = vmul.f32 %v556_v57, %v553_v52 }
 0x442   : > { %v620_v55 = vsel %vm372_vm1, %v615_v53, 0  ;;  %v563_v56 = vsel %vm272_vm0, %v562_v54, 0.0  ;;  %v558_v60 = vsel %vm272_vm0, %v557_v59, 0.0 }
 0x443   : > { %629 = vmatpush.bf16.msrb.mxu1 %v620_v55  ;;  %564 = vadd.xlane.f32.xlu1 %v563_v56 }
 0x445   : > { %v526_v58 = vpop.f32.mrf.mxu3 }
 0x44b   : > { %559 = vadd.xlane.f32.xlu1 %v558_v60 }
 0x4b6   : > { %v565_v61 = vpop.xlane.xlu1 %564 }
 0x4b7   : > { %566 = vxpose.xlu0.b32.start.end [1/1] (short) (narrow) %v565_v61, 8 }
 0x4be   : > { %v560_v0 = vpop.xlane.xlu1 %559 }
 0x55b   : > { %v582_v62 = vpop.trf.xlu0 }
 0x55c   : > { %v598_v63 = vperm.slane %v582_v62, 0 }
 0x55e   : > { %v599_v1 = vadd.f32 %v598_v63, %v560_v0 }
 0x560   : > { %v600_v2 = vmul.f32 0.2, %v599_v1 }
 0x562   : > { %v601_v3 = vmax.f32 %v599_v1, %v600_v2 }
 0x564   : > { %v602_v4 = vadd.f32 %v601_v3, %v1003_v34 }
 0x566   : > { %v603_v5 = vsel %vm355_vm3, %v602_v4, -inf }
 0x567   : > { %604 = vmax.xlane.f32.xlu1 %v603_v5 }
 0x5da   : > { %v605_v6 = vpop.xlane.xlu1 %604 }
 0x5db   : > { %v606_v7 = vsub.f32 %v602_v4, %v605_v6 }
 0x5dd   : > { %v607_v8 = vmul.f32 1.442695, %v606_v7 }
 0x5df   : > { %815 = vpow2.f32 %v607_v8 }
 0x5e5   : > { %v816_v9 = vpop.eup %815 }
 0x5e6   : > { %v609_v10 = vsel %vm355_vm3, %v816_v9, 0.0 }
 0x5e7   : > { %610 = vadd.xlane.f32.xlu1 %v609_v10 }
 0x65a   : > { %v611_v11 = vpop.xlane.xlu1 %610 }
 0x65b   : > { %817 = vrcp.f32 %v611_v11 }
 0x661   : > { %v818_v12 = vpop.eup %817 }
 0x662   : > { %v613_v13 = vmul.f32 %v818_v12, %v816_v9 }
 0x664   : > { %v614_v14 = vpack.c.bf16 %v613_v13, %v613_v13 }
 0x666   : > { %755 = vmatmul.msk.bf16.vlgmr.msrb.gmra.mxu1 %vm355_vm3, %v614_v14 }
 0x6e3   : > { %v631_v15 = vpop.f32.mrf.mxu1 }
 0x6e4   : > { %v636_v34 = vmin.f32 %v631_v15, 0.0  ;;  %vm635_vm6 = vcmp.gt.f32.partialorder %v631_v15, 0.0 }
 0x6e6   : > { %v637_v16 = vmul.f32 1.442695, %v636_v34 }
 0x6e8   : > { %819 = vpow2.f32 %v637_v16 }
 0x6eb   : > { %v633_v17 = vpop.f32.mrf.mxu1 }
 0x6ee   : > { %v820_v18 = vpop.eup %819 }
 0x6ef   : > { %v756_v19 = vadd.f32 -1.0, %v820_v18 }
 0x6f1   : > { %v640_v20 = vsel %vm635_vm6, %v631_v15, %v756_v19 }
 0x6f2   : > { %v641_v21 = vsel %vm272_vm0, %v640_v20, -inf }
 0x6f3   : > { %642 = vmax.xlane.f32.xlu1 %v641_v21 }
 0x766   : > { %v643_v22 = vpop.xlane.xlu1 %642 }
 0x767   : > { %v644_v23 = vsub.f32 %v640_v20, %v643_v22 }
 0x769   : > { %v645_v24 = vmul.f32 1.442695, %v644_v23 }
 0x76b   : > { %821 = vpow2.f32 %v645_v24 }
 0x771   : > { %v822_v25 = vpop.eup %821 }
 0x772   : > { %v647_v26 = vsel %vm272_vm0, %v822_v25, 0.0 }
 0x773   : > { %648 = vadd.xlane.f32.xlu1 %v647_v26 }
 0x7e6   : > { %v649_v27 = vpop.xlane.xlu1 %648 }
 0x7e7   : > { %823 = vlog2.f32 %v649_v27 }
 0x7ed   : > { %v824_v28 = vpop.eup %823 }
 0x7ee   : > { %v651_v29 = vmul.f32 0.6931472, %v824_v28 }
 0x7f0   : > { %v652_v30 = vsub.f32 %v644_v23, %v651_v29 }
 0x7f2   : > { %653 = vst.msk [vmem:[%s255_s20] sm:$0xff] %vm272_vm0, %v652_v30 }
 0x7f3   : > { %852 = shalt.err (!%p849_p3)
}
 0x7f4   : > { %761 = dma.vmem_to_hbm [thread:$0]  (%p964_p5), %s668_s26, 128, %s670_s28, %s655_s29  }
 0x7f5 PF: > { %p767_p4 = scmp.ge.s32.totalorder %s887_s24, 2  ;;  %s681_s14 = sand.u32 1, %s875_s21  }
 0x7f6   : > { %s682_s16 = scalar_lea.sflag [#allocation3], %s681_s14 }
 0x7f7   : > { %p764_p7 = pnand %p767_p4, %p968_p6 }
 0x7f9   : > { %p765_p8 = pneg %p764_p7 }
 0x7fb   : > { %870 = dma.done.wait (%p765_p8), %s682_s16, 128  }
 0x7fc   : > { %872 = vsyncadd (%p765_p8), %s682_s16, 4294967168  ;;  %p16_p9 = scmp.ge.s32.totalorder %s951_s27, 4   ;;  %s1095_s21 = smov %s879_s22 }
 0x7fd   : > { %s1096_s22 = smov %s883_s23  ;;  %s1097_s23 = smov %s962_s30 }
 0x7fe   : > { %s1098_s24 = smov %s951_s27  ;;  %18 = sbr.rel (!%p16_p9) target bundleno = 3 (0x3), region = 82 }
 0x803   :  { %688 = vsyncpa [#allocation3], 1 }
 0x804   :  { %690 = vsyncpa [#allocation3 + $0x1], 1 }

</bundles_post_ra>
